<compile_context>
chip_gen: v7x
topology: tpu7x:2x2x1
jax: 0.10.0
libtpu: 0.0.40
codegen_flags: <defaults>
</compile_context>

<pallas_src>
import jax
import jax.numpy as jnp
from jax.experimental import pallas as pl
from jax.experimental.pallas import tpu as pltpu


def _attn_gate_kernel(g_ref, s_ref, w1g_ref, w1s_ref, b1_ref, wo_ref, bo_ref,
                      o_ref):
    # g_ref: (Cg, T) f32, s_ref: (Cs, T) f32
    # w1g_ref: (Co, Cg) bf16, w1s_ref: (Co, Cs) bf16, wo_ref: (Co, Co) bf16
    # b1_ref, bo_ref: (Co, 1) f32;  o_ref: (Co, T) f32
    g = g_ref[...].astype(jnp.bfloat16)
    s_f32 = s_ref[...]
    s = s_f32.astype(jnp.bfloat16)

    pre = (jnp.dot(w1g_ref[...], g, preferred_element_type=jnp.float32)
           + jnp.dot(w1s_ref[...], s, preferred_element_type=jnp.float32)
           + b1_ref[...])
    h = jnp.maximum(pre, 0.0).astype(jnp.bfloat16)

    logits = (jnp.dot(wo_ref[...], h, preferred_element_type=jnp.float32)
              + bo_ref[...])
    a = jax.nn.sigmoid(logits)

    o_ref[...] = (a * s_f32).astype(o_ref.dtype)


def _fold_bn(w, b, gamma, beta, mean, var, eps=1e-5):
    """Fold eval-mode BatchNorm into a 1x1 conv.

    w: (Cout, Cin), b: (Cout,).  Returns (Cout, Cin) bf16 weight and (Cout,)
    f32 bias for y = W @ x + b (channel-major).
    """
    scale = gamma / jnp.sqrt(var + eps)                 # (Cout,)
    w_eff = w * scale[:, None]                          # (Cout, Cin)
    b_eff = (b - mean) * scale + beta                   # (Cout,)
    return w_eff.astype(jnp.bfloat16), b_eff.astype(jnp.float32)


def attention_gate_pallas(g, s, params, *, tile_pixels=1024):
    """g: (N, Cg, H, W); s: (N, Cs, H, W).  Returns (N, Co, H, W), Co == Cs."""
    N, Cg, H, W = g.shape
    Ns, Cs, Hs, Ws_ = s.shape
    assert (Ns, Hs, Ws_) == (N, H, W)
    HW = H * W

    w1g, b1g = _fold_bn(params["wg_w"], params["wg_b"], params["wg_gamma"],
                        params["wg_beta"], params["wg_mean"], params["wg_var"])
    w1s, b1s = _fold_bn(params["ws_w"], params["ws_b"], params["ws_gamma"],
                        params["ws_beta"], params["ws_mean"], params["ws_var"])
    Co = w1g.shape[0]
    assert Co == Cs, "final a * s broadcast requires out_c == in_c[1]"

    # fuse the two branch biases (one VPU add + one DMA stream saved)
    b1 = (b1g + b1s).reshape(Co, 1).astype(jnp.float32)
    wo = params["wo_w"].astype(jnp.bfloat16)            # (Co, Co)
    bo = params["wo_b"].reshape(Co, 1).astype(jnp.float32)

    # NCHW -> (N, C, H*W): pure reshape, no data movement
    g3 = g.reshape(N, Cg, HW)
    s3 = s.reshape(N, Cs, HW)

    # lane tile: full H*W if small, else a multiple-of-128 tile
    tile_pixels = max(128, (tile_pixels // 128) * 128)
    tile = HW if HW <= tile_pixels else tile_pixels

    grid = (N, pl.cdiv(HW, tile))

    out3 = pl.pallas_call(
        _attn_gate_kernel,
        out_shape=jax.ShapeDtypeStruct((N, Co, HW), jnp.float32),
        grid_spec=pltpu.PrefetchScalarGridSpec(
            num_scalar_prefetch=0,
            grid=grid,
            in_specs=[
                pl.BlockSpec((None, Cg, tile), lambda n, p: (n, 0, p)),  # g slab
                pl.BlockSpec((None, Cs, tile), lambda n, p: (n, 0, p)),  # s slab
                pl.BlockSpec((Co, Cg), lambda n, p: (0, 0)),             # Wg (BN folded)
                pl.BlockSpec((Co, Cs), lambda n, p: (0, 0)),             # Ws (BN folded)
                pl.BlockSpec((Co, 1), lambda n, p: (0, 0)),              # fused bias
                pl.BlockSpec((Co, Co), lambda n, p: (0, 0)),             # Wo
                pl.BlockSpec((Co, 1), lambda n, p: (0, 0)),              # bo
            ],
            out_specs=pl.BlockSpec((None, Co, tile), lambda n, p: (n, 0, p)),
        ),
        compiler_params=pltpu.CompilerParams(
            dimension_semantics=("parallel", "parallel"),
            vmem_limit_bytes=48 * 1024 * 1024),
    )(g3, s3, w1g, w1s, b1, wo, bo)

    return out3.reshape(N, Co, H, W)


def _make_params(key, in_c, out_c):
    """Deterministic parameter init (conv weights + BN stats), all float32."""
    ks = jax.random.split(key, 6)
    p = {}
    # Wg branch: conv1x1 in_c[0] -> out_c, then BN(out_c)
    p["wg_w"] = jax.random.normal(ks[0], (out_c, in_c[0]), jnp.float32) * 0.1
    p["wg_b"] = jax.random.normal(ks[1], (out_c,), jnp.float32) * 0.1
    p["wg_gamma"] = jnp.linspace(0.9, 1.1, out_c, dtype=jnp.float32)
    p["wg_beta"] = jnp.linspace(-0.05, 0.05, out_c, dtype=jnp.float32)
    p["wg_mean"] = jnp.linspace(-0.1, 0.1, out_c, dtype=jnp.float32)
    p["wg_var"] = jnp.linspace(0.8, 1.2, out_c, dtype=jnp.float32)
    # Ws branch: conv1x1 in_c[1] -> out_c, then BN(out_c)
    p["ws_w"] = jax.random.normal(ks[2], (out_c, in_c[1]), jnp.float32) * 0.1
    p["ws_b"] = jax.random.normal(ks[3], (out_c,), jnp.float32) * 0.1
    p["ws_gamma"] = jnp.linspace(1.05, 0.95, out_c, dtype=jnp.float32)
    p["ws_beta"] = jnp.linspace(0.02, -0.02, out_c, dtype=jnp.float32)
    p["ws_mean"] = jnp.linspace(0.05, -0.05, out_c, dtype=jnp.float32)
    p["ws_var"] = jnp.linspace(1.1, 0.9, out_c, dtype=jnp.float32)
    # output: conv1x1 out_c -> out_c (sigmoid applied in kernel)
    p["wo_w"] = jax.random.normal(ks[4], (out_c, out_c), jnp.float32) * 0.1
    p["wo_b"] = jax.random.normal(ks[5], (out_c,), jnp.float32) * 0.1
    return p


def _reference(g, s, params):
    """Pure-JAX f32 reference matching the PyTorch forward (BN in eval mode)."""
    def conv_bn(x, w, b, gamma, beta, mean, var, eps=1e-5):
        y = jnp.einsum("nchw,oc->nohw", x, w) + b[None, :, None, None]
        scale = gamma / jnp.sqrt(var + eps)
        return ((y - mean[None, :, None, None]) * scale[None, :, None, None]
                + beta[None, :, None, None])

    wg = conv_bn(g, params["wg_w"], params["wg_b"], params["wg_gamma"],
                 params["wg_beta"], params["wg_mean"], params["wg_var"])
    ws = conv_bn(s, params["ws_w"], params["ws_b"], params["ws_gamma"],
                 params["ws_beta"], params["ws_mean"], params["ws_var"])
    h = jnp.maximum(wg + ws, 0.0)
    logits = (jnp.einsum("nchw,oc->nohw", h, params["wo_w"])
              + params["wo_b"][None, :, None, None])
    a = jax.nn.sigmoid(logits)
    return a * s


if __name__ == "__main__":
    # in_c = (Cg, Cs); out_c must equal Cs for the final broadcast (as in PyTorch).
    N, Cg, Cs, H, W = 2, 4, 8, 16, 16
    out_c = Cs

    key = jax.random.PRNGKey(0)
    k_g, k_s, k_p = jax.random.split(key, 3)
    g = jax.random.normal(k_g, (N, Cg, H, W), jnp.float32)
    s = jax.random.normal(k_s, (N, Cs, H, W), jnp.float32)
    params = _make_params(k_p, (Cg, Cs), out_c)

    out = attention_gate_pallas(g, s, params)
    out = jax.block_until_ready(out)

    ref = _reference(g, s, params)
    assert out.shape == (N, Cs, H, W)
    # bf16 MXU path inside the kernel -> loosened tolerance vs the f32 reference
    assert jnp.allclose(out, ref, atol=3e-2, rtol=3e-2), "mismatch vs reference"

    print("KERNEL_OK")
</pallas_src>

<mosaic_0001>
module attributes {stable_mosaic.version = 11 : i64} {
  func.func @_attn_gate_kernel(%arg0: i32, %arg1: i32, %arg2: memref<1x4x256xf32, #tpu.memory_space<vmem>>, %arg3: memref<1x8x256xf32, #tpu.memory_space<vmem>>, %arg4: memref<8x4xbf16, #tpu.memory_space<vmem>>, %arg5: memref<8x8xbf16, #tpu.memory_space<vmem>>, %arg6: memref<8x1xf32, #tpu.memory_space<vmem>>, %arg7: memref<8x8xbf16, #tpu.memory_space<vmem>>, %arg8: memref<8x1xf32, #tpu.memory_space<vmem>>, %arg9: memref<1x8x256xf32, #tpu.memory_space<vmem>>) attributes {dimension_semantics = [#tpu.dimension_semantics<parallel>, #tpu.dimension_semantics<parallel>], iteration_bounds = array<i64: 2, 1>, scalar_prefetch = 0 : i64, scratch_operands = 0 : i64, tpu.core_type = #tpu.core_type<tc>, window_params = [{transform_indices = @transform_0, window_bounds = array<i64: 1, 4, 256>}, {transform_indices = @transform_1, window_bounds = array<i64: 1, 8, 256>}, {pipeline_mode = #tpu.pipeline_mode<synchronous>, transform_indices = @transform_2, window_bounds = array<i64: 8, 4>}, {pipeline_mode = #tpu.pipeline_mode<synchronous>, transform_indices = @transform_3, window_bounds = array<i64: 8, 8>}, {pipeline_mode = #tpu.pipeline_mode<synchronous>, transform_indices = @transform_4, window_bounds = array<i64: 8, 1>}, {pipeline_mode = #tpu.pipeline_mode<synchronous>, transform_indices = @transform_5, window_bounds = array<i64: 8, 8>}, {pipeline_mode = #tpu.pipeline_mode<synchronous>, transform_indices = @transform_6, window_bounds = array<i64: 8, 1>}, {transform_indices = @transform_7, window_bounds = array<i64: 1, 8, 256>}]} {
    %c0 = arith.constant 0 : index
    %c0_0 = arith.constant 0 : index
    %c0_1 = arith.constant 0 : index
    %0 = vector.load %arg2[%c0, %c0_0, %c0_1] : memref<1x4x256xf32, #tpu.memory_space<vmem>>, vector<1x4x256xf32>
    %1 = vector.shape_cast %0 : vector<1x4x256xf32> to vector<4x256xf32>
    %2 = arith.truncf %1 : vector<4x256xf32> to vector<4x256xbf16>
    %c0_2 = arith.constant 0 : index
    %c0_3 = arith.constant 0 : index
    %c0_4 = arith.constant 0 : index
    %3 = vector.load %arg3[%c0_2, %c0_3, %c0_4] : memref<1x8x256xf32, #tpu.memory_space<vmem>>, vector<1x8x256xf32>
    %4 = vector.shape_cast %3 : vector<1x8x256xf32> to vector<8x256xf32>
    %5 = arith.truncf %4 : vector<8x256xf32> to vector<8x256xbf16>
    %c0_5 = arith.constant 0 : index
    %c0_6 = arith.constant 0 : index
    %6 = vector.load %arg4[%c0_5, %c0_6] : memref<8x4xbf16, #tpu.memory_space<vmem>>, vector<8x4xbf16>
    %cst = arith.constant dense<0.000000e+00> : vector<8x256xf32>
    %7 = tpu.matmul %6, %2, %cst {dimension_numbers = #tpu.dot_dimension_numbers<[1], [0], [0], [1], [0, 0, 1, 1], [], []>} : vector<8x4xbf16>, vector<4x256xbf16>, vector<8x256xf32> -> vector<8x256xf32>
    %c0_7 = arith.constant 0 : index
    %c0_8 = arith.constant 0 : index
    %8 = vector.load %arg5[%c0_7, %c0_8] : memref<8x8xbf16, #tpu.memory_space<vmem>>, vector<8x8xbf16>
    %cst_9 = arith.constant dense<0.000000e+00> : vector<8x256xf32>
    %9 = tpu.matmul %8, %5, %cst_9 {dimension_numbers = #tpu.dot_dimension_numbers<[1], [0], [0], [1], [0, 0, 1, 1], [], []>} : vector<8x8xbf16>, vector<8x256xbf16>, vector<8x256xf32> -> vector<8x256xf32>
    %10 = arith.addf %7, %9 : vector<8x256xf32>
    %c0_10 = arith.constant 0 : index
    %c0_11 = arith.constant 0 : index
    %11 = vector.load %arg6[%c0_10, %c0_11] : memref<8x1xf32, #tpu.memory_space<vmem>>, vector<8x1xf32>
    %12 = vector.broadcast %11 : vector<8x1xf32> to vector<8x256xf32>
    %13 = arith.addf %10, %12 : vector<8x256xf32>
    %cst_12 = arith.constant 0.000000e+00 : f32
    %14 = vector.broadcast %cst_12 : f32 to vector<8x256xf32>
    %15 = arith.maximumf %13, %14 : vector<8x256xf32>
    %16 = arith.truncf %15 : vector<8x256xf32> to vector<8x256xbf16>
    %c0_13 = arith.constant 0 : index
    %c0_14 = arith.constant 0 : index
    %17 = vector.load %arg7[%c0_13, %c0_14] : memref<8x8xbf16, #tpu.memory_space<vmem>>, vector<8x8xbf16>
    %cst_15 = arith.constant dense<0.000000e+00> : vector<8x256xf32>
    %18 = tpu.matmul %17, %16, %cst_15 {dimension_numbers = #tpu.dot_dimension_numbers<[1], [0], [0], [1], [0, 0, 1, 1], [], []>} : vector<8x8xbf16>, vector<8x256xbf16>, vector<8x256xf32> -> vector<8x256xf32>
    %c0_16 = arith.constant 0 : index
    %c0_17 = arith.constant 0 : index
    %19 = vector.load %arg8[%c0_16, %c0_17] : memref<8x1xf32, #tpu.memory_space<vmem>>, vector<8x1xf32>
    %20 = vector.broadcast %19 : vector<8x1xf32> to vector<8x256xf32>
    %21 = arith.addf %18, %20 : vector<8x256xf32>
    %22 = arith.negf %21 : vector<8x256xf32>
    %23 = math.exp %22 : vector<8x256xf32>
    %cst_18 = arith.constant 1.000000e+00 : f32
    %24 = vector.broadcast %cst_18 : f32 to vector<8x256xf32>
    %25 = arith.addf %24, %23 : vector<8x256xf32>
    %26 = arith.divf %24, %25 : vector<8x256xf32>
    %27 = arith.mulf %26, %4 : vector<8x256xf32>
    %c0_19 = arith.constant 0 : index
    %c0_20 = arith.constant 0 : index
    %c0_21 = arith.constant 0 : index
    %28 = vector.load %arg9[%c0_19, %c0_20, %c0_21] : memref<1x8x256xf32, #tpu.memory_space<vmem>>, vector<1x8x256xf32>
    %29 = vector.shape_cast %28 : vector<1x8x256xf32> to vector<8x256xf32>
    %30 = vector.shape_cast %27 : vector<8x256xf32> to vector<1x8x256xf32>
    tpu.vector_store %arg9[%c0_19, %c0_20, %c0_21], %30 {strides = array<i32>} : memref<1x8x256xf32, #tpu.memory_space<vmem>>, vector<1x8x256xf32>,
    return
  }
  func.func @transform_0(%arg0: i32, %arg1: i32) -> (i32, i32, i32) {
    %c0_i32 = arith.constant 0 : i32
    %c0_i32_0 = arith.constant 0 : i32
    return %arg0, %c0_i32, %arg1 : i32, i32, i32
  }
  func.func @transform_1(%arg0: i32, %arg1: i32) -> (i32, i32, i32) {
    %c0_i32 = arith.constant 0 : i32
    %c0_i32_0 = arith.constant 0 : i32
    return %arg0, %c0_i32, %arg1 : i32, i32, i32
  }
  func.func @transform_2(%arg0: i32, %arg1: i32) -> (i32, i32) {
    %c0_i32 = arith.constant 0 : i32
    %c0_i32_0 = arith.constant 0 : i32
    %c0_i32_1 = arith.constant 0 : i32
    return %c0_i32, %c0_i32_0 : i32, i32
  }
  func.func @transform_3(%arg0: i32, %arg1: i32) -> (i32, i32) {
    %c0_i32 = arith.constant 0 : i32
    %c0_i32_0 = arith.constant 0 : i32
    %c0_i32_1 = arith.constant 0 : i32
    return %c0_i32, %c0_i32_0 : i32, i32
  }
  func.func @transform_4(%arg0: i32, %arg1: i32) -> (i32, i32) {
    %c0_i32 = arith.constant 0 : i32
    %c0_i32_0 = arith.constant 0 : i32
    %c0_i32_1 = arith.constant 0 : i32
    return %c0_i32, %c0_i32_0 : i32, i32
  }
  func.func @transform_5(%arg0: i32, %arg1: i32) -> (i32, i32) {
    %c0_i32 = arith.constant 0 : i32
    %c0_i32_0 = arith.constant 0 : i32
    %c0_i32_1 = arith.constant 0 : i32
    return %c0_i32, %c0_i32_0 : i32, i32
  }
  func.func @transform_6(%arg0: i32, %arg1: i32) -> (i32, i32) {
    %c0_i32 = arith.constant 0 : i32
    %c0_i32_0 = arith.constant 0 : i32
    %c0_i32_1 = arith.constant 0 : i32
    return %c0_i32, %c0_i32_0 : i32, i32
  }
  func.func @transform_7(%arg0: i32, %arg1: i32) -> (i32, i32, i32) {
    %c0_i32 = arith.constant 0 : i32
    %c0_i32_0 = arith.constant 0 : i32
    return %arg0, %c0_i32, %arg1 : i32, i32, i32
  }
}

</mosaic_0001>

<bundles_post_ra>
// kernel: tpu_custom_call.1
= control target key start
LH: loop header
LB: loop body
LE: loop exit
PB: predicated region body
PF: predicated region fallthrough
CT: control target
= control target key end

     0   :  { %12 = vsyncpa [#allocation3], 0  ;;  %s1142_s0 = inlined_call_operand.vmem [shape: f32[2,4,256], index: 0, kind: input, shape index: {}]   ;;  %s1143_s1 = inlined_call_operand.hbm [shape: f32[2,8,256], index: 1, kind: input, shape index: {}]   ;;  %s1144_s2 = inlined_call_operand.vmem [shape: bf16[8,4], index: 2, kind: input, shape index: {}]   ;;  %s1145_s3 = inlined_call_operand.vmem [shape: bf16[8,8], index: 3, kind: input, shape index: {}]   ;;  %s1146_s4 = inlined_call_operand.vmem [shape: f32[8,1], index: 4, kind: input, shape index: {}]   ;;  %s1147_s5 = inlined_call_operand.vmem [shape: bf16[8,8], index: 5, kind: input, shape index: {}]   ;;  %s1148_s6 = inlined_call_operand.vmem [shape: f32[8,1], index: 6, kind: input, shape index: {}]   ;;  %s1149_s7 = inlined_call_operand.hbm [shape: f32[2,8,256], index: 7, kind: output, shape index: {}]  }
   0x1   :  { %14 = vsyncpa [#allocation3 + $0x1], 0 }
   0x2   :  { %15 = vsyncpa [#allocation4], 0 }
   0x3   :  { %17 = vsyncpa [#allocation4 + $0x1], 0  ;;  %s930_s24 = smov 0   ;;  %s932_s25 = smov 0  }
   0x4   :  { %s934_s26 = smov 0   ;;  %s936_s27 = smov 0  }
   0x5   :  { %s938_s28 = smov 0   ;;  %s940_s29 = smov 0  }
   0x6 LB: > { %s672_s30 = sadd.s32 4294967295, %s885_s29   ;;  %s673_s8 = sadd.s32 4294967294, %s885_s29   ;;  %s885_s29 = sphi %s940_s29, %s23_s29   ;;  %s881_s28 = sphi %s938_s28, %s1165_s28   ;;  %s877_s27 = sphi %s936_s27, %s1164_s27   ;;  %s873_s26 = sphi %s934_s26, %s1163_s26   ;;  %s869_s25 = sphi %s932_s25, %s1162_s25   ;;  %s865_s24 = sphi %s930_s24, %s1161_s24  }
   0x7   : > { %s35_s9 = sadd.s32 1, %s881_s28  ;;  %s72_s10 = sadd.s32 1, %s873_s26 }
   0x8   : > { %p37_p0 = scmp.ge.s32.totalorder %s35_s9, 2  ;;  %p79_p1 = scmp.ne.s32.totalorder %s873_s26, %s869_s25 }
   0x9   : > { %p80_p2 = scmp.eq.s32.totalorder %s885_s29, 0  ;;  %p85_p3 = scmp.ne.s32.totalorder %s869_s25, %s865_s24 }
   0xa   : > { %s1167_s9 = smov (%p37_p0, %s35_s9), 0  ;;  %p86_p5 = scmp.eq.s32.totalorder %s672_s30, 0 }
   0xb   : > { %p971_p4 = por %p80_p2, %p79_p1  ;;  %s67_s12 = ssub.s32 %s881_s28, %s1167_s9 }
   0xc   : > { %p216_p6 = scmp.eq.s32.totalorder %s672_s30, 1  ;;  %p70_p7 = scmp.eq.s32.totalorder %s67_s12, 0 }
   0xd   : > { %p977_p8 = por %p86_p5, %p85_p3  ;;  %p222_p10 = scmp.eq.s32.totalorder %s673_s8, 1 }
   0xe   : > { %p981_p9 = por %p216_p6, %p79_p1  ;;  %p712_p13 = scmp.lt.s32.totalorder %s885_s29, 2 }
   0xf   : > { %s986_s15 = scalar_select %p70_p7, %s873_s26, %s72_s10  }
  0x10   : > { %s1153_s14 = scalar_select %p981_p9, 1, 0 }
  0x11   : > { %p988_p11 = por %p222_p10, %p85_p3  ;;  %s270_s17 = sand.u32 1, %s873_s26  }
  0x12   : > { %s676_s18 = sshll.u32 %s270_s17, 4  ;;  %s697_s19 = sshll.u32 %s881_s28, 8 }
  0x13   : > { %s1154_s16 = scalar_select %p988_p11, 1, 0 }
  0x14   : > { %s999_s22 = scalar_lea.hbm %s1143_s1, %s697_s19  ;;  %s274_s23 = scalar_lea.vmem [#allocation2], %s676_s18 }
  0x15   : > { %s284_s30 = sshll.u32 %s274_s23, 4  ;;  %p1005_p0 = pnand %p712_p13, %p971_p4  ;;  %s1001_s30 = int_to_ptr.vmem [resolvable:$true] %s284_s30 }
  0x16   : > { %s271_s10 = scalar_lea.sflag [#allocation3], %s270_s17  ;;  %s773_s12 = scalar_lea.hbm %s999_s22, 256 }
  0x17   : > { %p774_p3 = scmp.ne.s32.totalorder %s999_s22, %s773_s12  ;;  %p775_p5 = pneg %p1005_p0 }
  0x18   : > { %s778_s11 = scalar_lea.hbm %s1143_s1, 512  ;;  %p779_p4 = scmp.lt.u32.totalorder %s999_s22, %s1143_s1 }
  0x19   : > { %p776_p6 = pnand %p775_p5, %p774_p3  ;;  %p780_p10 = scmp.lt.u32.totalorder %s778_s11, %s773_s12 }
  0x1a   : > { %p782_p12 = scmp.lt.u32.totalorder %s773_s12, %s999_s22 }
  0x1b   : > { %p777_p7 = pneg %p776_p6  ;;  %p781_p13 = por %p780_p10, %p779_p4 }
  0x1d   : > { %p783_p1 = por %p782_p12, %p781_p13 }
  0x1f   : > { %p784_p2 = pnand %p783_p1, %p777_p7 }
  0x21   : > { %787 = shalt.err (!%p784_p2)
}
  0x22   : > { %s788_s17 = scalar_lea.vmem %s1001_s30, 256  ;;  %s887_s23 = smov [#allocation2]  }
  0x23   : > { %p789_p3 = scmp.ne.s32.totalorder %s1001_s30, %s788_s17  ;;  %s793_s18 = sshll.u32 %s887_s23, 4  ;;  %s794_s18 = int_to_ptr.vmem [resolvable:$false] %s793_s18 }
  0x24   : > { %s795_s19 = scalar_lea.vmem %s794_s18, 512  ;;  %p796_p9 = scmp.lt.s32.totalorder %s1001_s30, %s794_s18 }
  0x25   : > { %p791_p6 = pnand %p789_p3, %p775_p5  ;;  %p797_p4 = scmp.lt.s32.totalorder %s795_s19, %s788_s17 }
  0x27   : > { %p792_p11 = pneg %p791_p6  ;;  %p798_p10 = por %p797_p4, %p796_p9 }
  0x29   : > { %p799_p12 = pnand %p798_p10, %p792_p11 }
  0x2b   : > { %802 = shalt.err (!%p799_p12)
}
  0x2c   : > { %707 = dma.hbm_to_vmem [thread:$0]  (!%p1005_p0), %s999_s22, 256, %s1001_s30, %s271_s10  }
  0x2d   : > { %p1156_p1 = scmp.lt.s32.totalorder %s885_s29, 3  ;;  %p1157_p2 = scmp.ge.s32.totalorder %s885_s29, 1 }
  0x2f   : > { %p290_p5 = pnand %p1157_p2, %p1156_p1 }
  0x30   : > { %s1041_s12 = sand.u32 (!%p290_p5), 1, %s869_s25  }
  0x31   : > { %293 = sbr.rel (%p290_p5) target bundleno = 554 (0x22a), region = 48  ;;  %s680_s11 = sshll.u32 (!%p290_p5), %s1041_s12, 4 }
  0x32   : > { %s296_s20 = scalar_lea.sflag (!%p290_p5), [#allocation3], %s1041_s12  ;;  %s299_s8 = scalar_lea.vmem (!%p290_p5), [#allocation2], %s680_s11 }
  0x38   : > { %856 = dma.done.wait (%p977_p8), %s296_s20, 256  }
  0x39   : > { %858 = vsyncadd (%p977_p8), %s296_s20, 4294967040  ;;  %p340_p9 = scmp.lt.s32.totalorder %s877_s27, 1  ;;  %v888_v0 = vmov 0   ;;  %v1056_v1 = vld [vmem:[%s299_s8 + $0x8] sm:$0xff]  ;;  %vm368_vm0 = vcmask 1043456   ;;  %v1058_v2 = vld [vmem:[%s299_s8] sm:$0xff] }
  0x3a   : > { %407 = vmatprep.mubr.bf16.mxu0 %v888_v0  ;;  %459 = vmatprep.mubr.bf16.mxu1 %v888_v0  ;;  %vm420_vm1 = vcmask 1041408   ;;  %v361_v4 = vpack.c.bf16 %v1056_v1, %v1056_v1  ;;  %v360_v5 = vpack.c.bf16 %v1058_v2, %v1058_v2  ;;  %v468_v8 = vld [vmem:[%s1146_s4] sm:$0xff]  ;;  %vm364_vm2 = vcmask 64512   ;;  %s338_s13 = scalar_lea.vmem [#allocation5], %s680_s11  ;;  %p1158_p11 = scmp.ne.s32.totalorder %s1153_s14, 0 }
  0x3b   : > { %s341_s22 = scalar_select %p340_p9, %s877_s27, 1  ;;  %763 = vset.pattern.permute.xlu0 %v888_v0  ;;  %v481_v12 = vld [vmem:[%s1148_s6] sm:$0xff]  ;;  %vm416_vm3 = vcmask 31744  }
  0x3c   : > { %471 = vperm.xlu0 %763, %v468_v8   ;;  %684 = vmatprep.subr.msk.bf16.mxu0 %vm368_vm0, %v361_v4  ;;  %v370_v9 = vsel %vm368_vm0, %v360_v5, 0  ;;  %v363_v13 = vld [vmem:[%s1145_s3] sm:$0xf]  ;;  %s570_s23 = sshll.u32 %s338_s13, 4  ;;  %s889_s8 = smov [#allocation5]   ;;  %s1095_s23 = int_to_ptr.vmem [resolvable:$true] %s570_s23 }
  0x3d   : > { %s698_s30 = sshll.u32 %s341_s22, 3  ;;  %376 = vmatpush1.bf16.msra.mxu0 %v370_v9  ;;  %v362_v14 = vld [vmem:[%s1144_s2] sm:$0xf]  ;;  %s803_s11 = scalar_lea.vmem %s1095_s23, 256 }
  0x3e   : > { %s347_s17 = scalar_lea.vmem %s1142_s0, %s698_s30  ;;  %v480_v33 = vld [vmem:[%s1147_s5] sm:$0xf]  ;;  %p804_p8 = scmp.ne.s32.totalorder %s1095_s23, %s803_s11 }
  0x3f   : > { %v352_v3 = vld [vmem:[%s347_s17] sm:$0xff]  ;;  %s699_s17 = sshll.u32 %s877_s27, 8  ;;  %s554_s27 = scalar_lea.sflag [#allocation4], %s1041_s12 }
  0x40   : > { %v354_v6 = vcombine.high %v352_v3, %v352_v3  ;;  %v356_v7 = vpack.c.bf16 %v352_v3, %v352_v3  ;;  %484 = vperm.xlu0 %763, %v481_v12   ;;  %685 = vmatmul.mubr.msk.bf16.vlgmr.msra.gmra.mrb[0].mxu0 %vm364_vm2, %v363_v13  ;;  %s1093_s20 = scalar_lea.hbm %s1149_s7, %s699_s17  ;;  %p805_p0 = pnand %p804_p8, %p1158_p11 }
  0x41   : > { %528 = vmatprep.mubr.bf16.mxu0 %v888_v0  ;;  %s807_s22 = sshll.u32 %s889_s8, 4  ;;  %s808_s22 = int_to_ptr.vmem [resolvable:$false] %s807_s22 }
  0x42   : > { %v357_v10 = vpack.c.bf16 %v354_v6, %v354_v6  ;;  %v422_v11 = vsel %vm420_vm1, %v356_v7, 0  ;;  %p806_p7 = pneg %p805_p0  ;;  %s809_s30 = scalar_lea.vmem %s808_s22, 512 }
  0x43   : > { %p810_p13 = scmp.lt.s32.totalorder %s1095_s23, %s808_s22  ;;  %p811_p3 = scmp.lt.s32.totalorder %s809_s30, %s803_s11 }
  0x44   : > { %686 = vmatprep.subr.msk.bf16.mxu1 %vm420_vm1, %v357_v10 }
  0x45   : > { %428 = vmatpush1.bf16.msra.mxu1 %v422_v11  ;;  %p812_p6 = por %p811_p3, %p810_p13 }
  0x47   : > { %p813_p4 = pnand %p812_p6, %p806_p7 }
  0x48   : > { %687 = vmatmul.mubr.msk.bf16.vlgmr.msra.gmra.mrb[0].mxu1 %vm416_vm3, %v362_v14 }
  0xbb   : > { %v472_v22 = vpop.permute.xlu0 %471 }
  0xbf   : > { %v485_v34 = vpop.permute.xlu0 %484 }
 0x113   : > { %v409_v15 = vpop.f32.mrb[0].mxu0 }
 0x114   : > { %v411_v16 = vpop.f32.mrb[1].mxu0 }
 0x115   : > { %v413_v17 = vpop.f32.mrb[2].mxu0 }
 0x116   : > { %v414_v20 = vpop.f32.mrb[3].mxu0 }
 0x11b   : > { %v461_v18 = vpop.f32.mrb[0].mxu1 }
 0x11c   : > { %v462_v19 = vadd.f32 %v461_v18, %v409_v15  ;;  %v463_v21 = vpop.f32.mrb[1].mxu1 }
 0x11d   : > { %v464_v23 = vadd.f32 %v463_v21, %v411_v16  ;;  %v465_v24 = vpop.f32.mrb[2].mxu1 }
 0x11e   : > { %v474_v25 = vadd.f32 %v472_v22, %v462_v19  ;;  %v466_v26 = vpop.f32.mrb[3].mxu1 }
 0x11f   : > { %v475_v27 = vadd.f32 %v472_v22, %v464_v23 }
 0x120   : > { %v476_v28 = vmax.f32 %v474_v25, 0.0 }
 0x121   : > { %v477_v29 = vmax.f32 %v475_v27, 0.0 }
 0x122   : > { %v478_v30 = vpack.c.bf16 %v476_v28, %v476_v28 }
 0x123   : > { %v479_v31 = vpack.c.bf16 %v477_v29, %v477_v29 }
 0x124   : > { %v491_v32 = vsel %vm368_vm0, %v478_v30, 0 }
 0x125   : > { %688 = vmatprep.subr.msk.bf16.mxu0 %vm368_vm0, %v479_v31 }
 0x126   : > { %497 = vmatpush1.bf16.msra.mxu0 %v491_v32 }
 0x129   : > { %689 = vmatmul.mubr.msk.bf16.vlgmr.msra.gmra.mrb[4].mxu0 %vm364_vm2, %v480_v33 }
 0x1fc   : > { %v530_v35 = vpop.f32.mrb[4].mxu0 }
 0x1fd   : > { %v531_v36 = vadd.f32 %v530_v35, %v485_v34  ;;  %v532_v37 = vpop.f32.mrb[5].mxu0 }
 0x1fe   : > { %v533_v38 = vadd.f32 %v532_v37, %v485_v34  ;;  %v534_v39 = vpop.f32.mrb[6].mxu0 }
 0x1ff   : > { %v690_v40 = vmul.f32 -1.442695, %v531_v36  ;;  %v535_v41 = vpop.f32.mrb[7].mxu0 }
 0x200   : > { %v691_v42 = vmul.f32 -1.442695, %v533_v38 }
 0x201   : > { %765 = vpow2.f32 %v690_v40 }
 0x202   : > { %767 = vpow2.f32 %v691_v42 }
 0x20b   : > { %v766_v43 = vpop.eup %765 }
 0x20c   : > { %v768_v44 = vpop.eup %767  ;;  %v543_v45 = vadd.f32 1.0, %v766_v43 }
 0x20d   : > { %v544_v46 = vadd.f32 1.0, %v768_v44 }
 0x20e   : > { %769 = vrcp.f32 %v543_v45 }
 0x20f   : > { %771 = vrcp.f32 %v544_v46 }
 0x218   : > { %v770_v47 = vpop.eup %769 }
 0x219   : > { %v772_v48 = vpop.eup %771  ;;  %v549_v49 = vmul.f32 %v770_v47, %v1058_v2 }
 0x21a   : > { %v550_v50 = vmul.f32 %v772_v48, %v1056_v1 }
 0x21b   : > { %551 = vst [vmem:[%s338_s13] sm:$0xff] %v549_v49 }
 0x21c   : > { %552 = vst [vmem:[%s338_s13 + $0x8] sm:$0xff] %v550_v50 }
 0x21d   : > { %816 = shalt.err (!%p813_p4)
}
 0x21e   : > { %s817_s12 = scalar_lea.hbm %s1093_s20, 256  ;;  %s821_s17 = scalar_lea.hbm %s1149_s7, 512 }
 0x21f   : > { %p818_p10 = scmp.ne.s32.totalorder %s1093_s20, %s817_s12  ;;  %p822_p2 = scmp.lt.u32.totalorder %s1093_s20, %s1149_s7 }
 0x220   : > { %p823_p5 = scmp.lt.u32.totalorder %s821_s17, %s817_s12  ;;  %p825_p8 = scmp.lt.u32.totalorder %s817_s12, %s1093_s20 }
 0x221   : > { %p819_p12 = pnand %p818_p10, %p1158_p11 }
 0x222   : > { %p824_p9 = por %p823_p5, %p822_p2 }
 0x223   : > { %p820_p1 = pneg %p819_p12 }
 0x224   : > { %p826_p0 = por %p825_p8, %p824_p9 }
 0x226   : > { %p827_p7 = pnand %p826_p0, %p820_p1 }
 0x228   : > { %830 = shalt.err (!%p827_p7)
}
 0x229   : > { %702 = dma.vmem_to_hbm [thread:$0]  (%p1158_p11), %s1095_s23, 256, %s1093_s20, %s554_s27  }
 0x22a PF: > { %s582_s19 = sand.u32 1, %s865_s24   ;;  %p1159_p13 = scmp.ne.s32.totalorder %s1154_s16, 0 }
 0x22b   : > { %p1160_p3 = scmp.ge.s32.totalorder %s885_s29, 2  ;;  %s583_s11 = scalar_lea.sflag [#allocation4], %s582_s19 }
 0x22d   : > { %p709_p6 = pnand %p1160_p3, %p1159_p13 }
 0x22f   : > { %860 = dma.done.wait (!%p709_p6), %s583_s11, 256  }
 0x230   : > { %862 = vsyncadd (!%p709_p6), %s583_s11, 4294967040  ;;  %s23_s29 = sadd.s32 1, %s885_s29   ;;  %s1161_s24 = smov %s869_s25 }
 0x231   : > { %p20_p4 = scmp.ge.s32.totalorder %s23_s29, 4   ;;  %s1162_s25 = smov %s873_s26 }
 0x232   : > { %s1163_s26 = smov %s986_s15  ;;  %s1164_s27 = smov %s881_s28 }
 0x233   : > { %s1165_s28 = smov %s1167_s9  ;;  %22 = sbr.rel (!%p20_p4) target bundleno = 6 (0x6), region = 96 }
 0x23a   :  { %588 = vsyncpa [#allocation3], 1 }
 0x23b   :  { %590 = vsyncpa [#allocation3 + $0x1], 1 }
 0x23c   :  { %591 = vsyncpa [#allocation4], 1 }
 0x23d   :  { %593 = vsyncpa [#allocation4 + $0x1], 1 }

</bundles_post_ra>
